<compile_context>
chip_gen: v5e
topology: v5e:2x2
jax: 0.10.0
libtpu: 0.0.40
codegen_flags: <defaults>
</compile_context>

<pallas_src>
import math

import jax
import jax.numpy as jnp
from jax.experimental import pallas as pl
from jax.experimental.pallas import tpu as pltpu

LANES = 128
MAX_TILE_ROWS = 8192  # 8192 * 128 * 4 B = 4 MiB f32 block; 8 MiB double-buffered.


def _round_up(x, m):
    return ((x + m - 1) // m) * m


def _sublane_multiple(dtype):
    """Minimum sublane tile for a dtype: 8 (32-bit), 16 (16-bit), 32 (8-bit)."""
    bits = jnp.dtype(dtype).itemsize * 8
    if bits >= 32:
        return 8
    if bits == 16:
        return 16
    return 32


def _num_tensorcores():
    """Best-effort TensorCores per device: 2 on v7x, 1 on v5e/v6e."""
    try:
        info = pltpu.get_tpu_info()
        for attr in ("num_cores", "core_count", "num_tensorcores"):
            n = getattr(info, attr, None)
            if n and 1 <= int(n) <= 4:
                return int(n)
    except Exception:
        pass
    try:
        kind = jax.devices()[0].device_kind.lower()
        if "v7" in kind or "tpu7" in kind:
            return 2
    except Exception:
        pass
    return 1


def _neg_log_mean(x, max_tile_rows=MAX_TILE_ROWS, num_splits=None):
    """mean(-log(x)) over all elements of x via a tiled Pallas reduction."""
    x_flat = x.reshape(-1)
    numel = int(x_flat.size)
    dtype = x_flat.dtype
    sub = _sublane_multiple(dtype)

    # Geometry: rows of 128 lanes.  Zero-copy (pure metadata reshape) whenever
    # numel % 128 == 0 and there are at least `sub` rows; otherwise pad the
    # tail with 1.0 (-log(1) == 0 contributes nothing).
    rows = max(_round_up(numel, LANES) // LANES, sub)
    padded = rows * LANES
    if padded != numel:
        x_flat = jnp.pad(x_flat, (0, padded - numel), constant_values=1.0)
    x2d = x_flat.reshape(rows, LANES)  # native dtype; cast to f32 in-kernel

    # Tile rows: multiple of the sublane packing, never overhanging the array
    # start (ragged *last* tile only -> standard Pallas partial edge block).
    tile_r = min(_round_up(max_tile_rows, sub), (rows // sub) * sub)
    total_tiles = -(-rows // tile_r)

    nsplit = _num_tensorcores() if num_splits is None else int(num_splits)
    nsplit = max(1, min(nsplit, total_tiles))
    tiles_per_split = -(-total_tiles // nsplit)

    def kernel(x_ref, out_ref):
        s = pl.program_id(0)
        i = pl.program_id(1)

        @pl.when(i == 0)
        def _():
            out_ref[...] = jnp.zeros_like(out_ref)

        # Virtual (unclamped) tile index -> global row of every element in the
        # block.  Rows past the real array (ragged last tile, or the clamped
        # duplicate tile when total_tiles % nsplit != 0) are replaced by 1.0
        # BEFORE the log, so garbage can never become NaN/Inf.
        vtile = s * tiles_per_split + i
        row0 = vtile * tile_r
        local_row = jax.lax.broadcasted_iota(jnp.int32, (tile_r, LANES), 0)
        valid = local_row < (rows - row0)

        x_f32 = x_ref[...].astype(jnp.float32)
        neg_log = -jnp.log(jnp.where(valid, x_f32, 1.0))

        # Fold (tile_r, 128) -> (8, 128) with plain VPU vreg adds; the
        # cross-lane/sublane reduce is deferred to the wrapper.
        out_ref[...] += jnp.sum(neg_log.reshape(tile_r // 8, 8, LANES), axis=0)

    out = pl.pallas_call(
        kernel,
        out_shape=jax.ShapeDtypeStruct((nsplit, 8, LANES), jnp.float32),
        grid=(nsplit, tiles_per_split),
        in_specs=[
            pl.BlockSpec(
                (tile_r, LANES),
                # Clamp so a duplicate (virtual) tile never issues a fully
                # out-of-bounds DMA; its contribution is masked in-kernel.
                lambda s, i: (
                    jnp.minimum(s * tiles_per_split + i, total_tiles - 1),
                    0,
                ),
            )
        ],
        out_specs=pl.BlockSpec((None, 8, LANES), lambda s, i: (s, 0, 0)),
        compiler_params=pltpu.CompilerParams(
            dimension_semantics=("parallel", "arbitrary")
        ),
    )(x2d)

    return jnp.sum(out) / jnp.float32(numel)


def label_smoothing_loss(inputs, targets, smoothing=0.1,
                         max_tile_rows=MAX_TILE_ROWS, num_splits=None):
    """Pallas implementation of LabelSmoothingLoss.forward.

    inputs : float array with strictly positive values (e.g. probabilities).
    targets: 1-D int array of indices into the leading axis of `inputs`.
    returns: scalar float32 loss.
    """
    inputs = jnp.asarray(inputs)
    targets = jnp.asarray(targets).astype(jnp.int32).reshape(-1)

    numel = int(inputs.size)
    p = 1.0 - float(smoothing)
    # Matches PyTorch: for numel == 1 this raises (division by zero), as torch does.
    q = float(smoothing) / (numel - 1)

    # Streaming part (HBM-bound Pallas kernel): mean(-log(x)).
    mean_neg_log_x = _neg_log_mean(
        inputs, max_tile_rows=max_tile_rows, num_splits=num_splits
    )

    # Constant part: mean(-log(one_hot)).  `one_hot[targets] = p` indexes the
    # leading axis and collapses duplicate targets, so count distinct targets
    # on the (tiny) scalar path to keep exact PyTorch semantics.
    per_hit = numel // int(inputs.shape[0])  # elements written per target index
    n_t = int(targets.shape[0])
    if n_t == 0:
        n_distinct = jnp.int32(0)
    elif n_t == 1:
        n_distinct = jnp.int32(1)
    else:
        srt = jnp.sort(targets)
        n_distinct = 1 + jnp.sum((srt[1:] != srt[:-1]).astype(jnp.int32))

    n_p = (n_distinct * per_hit).astype(jnp.float32)
    log_p = math.log(p)
    log_q = math.log(q)
    mean_neg_log_onehot = -(n_p * log_p + (jnp.float32(numel) - n_p) * log_q) / numel

    return mean_neg_log_x + mean_neg_log_onehot


def _reference(inputs, targets, smoothing=0.1):
    numel = inputs.size
    p = 1.0 - smoothing
    q = smoothing / (numel - 1)
    one_hot = jnp.full(inputs.shape, q, dtype=jnp.float32)
    one_hot = one_hot.at[targets].set(p)  # leading-axis indexing, like PyTorch
    loss = -jnp.log(one_hot * inputs.astype(jnp.float32))
    return loss.mean()


if __name__ == "__main__":
    key = jax.random.PRNGKey(0)
    k1, k2, k3, k4, k5, k6, k7, k8, k9 = jax.random.split(key, 9)

    # Case 1: 128-aligned (zero-copy path), duplicated target (dedup path).
    N1 = 1024
    x1 = jax.nn.softmax(jax.random.normal(k1, (N1,), dtype=jnp.float32))
    t1 = jax.random.randint(k2, (4,), 0, N1, dtype=jnp.int32)
    t1 = jnp.concatenate([t1, t1[:1]])  # duplicate on purpose
    got1 = jax.block_until_ready(label_smoothing_loss(x1, t1, smoothing=0.1))
    ref1 = _reference(x1, t1, smoothing=0.1)
    assert jnp.allclose(got1, ref1, rtol=1e-4, atol=1e-5), (got1, ref1)

    # Case 2: length not a multiple of 128 (exercises the small pad fallback).
    N2 = 2000
    x2 = jax.nn.softmax(jax.random.normal(k3, (N2,), dtype=jnp.float32))
    t2 = jax.random.randint(k4, (3,), 0, N2, dtype=jnp.int32)
    got2 = jax.block_until_ready(label_smoothing_loss(x2, t2, smoothing=0.1))
    ref2 = _reference(x2, t2, smoothing=0.1)
    assert jnp.allclose(got2, ref2, rtol=1e-4, atol=1e-5), (got2, ref2)

    # Case 3: ragged tiles + forced 2-way split with an odd tile count:
    # rows=36, tile_r=8 -> 5 real tiles, grid (2, 3) -> one clamped duplicate
    # tile and one partial edge tile, both handled by the in-kernel mask.
    N3 = 4608
    x3 = jax.nn.softmax(jax.random.normal(k5, (N3,), dtype=jnp.float32))
    t3 = jax.random.randint(k6, (2,), 0, N3, dtype=jnp.int32)
    got3 = jax.block_until_ready(
        label_smoothing_loss(x3, t3, smoothing=0.1, max_tile_rows=8, num_splits=2)
    )
    ref3 = _reference(x3, t3, smoothing=0.1)
    assert jnp.allclose(got3, ref3, rtol=1e-4, atol=1e-5), (got3, ref3)

    # Case 4: bf16 input -> dtype-aware (16,128) min tile, in-kernel f32 cast.
    N4 = 4096
    x4 = jax.nn.softmax(jax.random.normal(k7, (N4,), dtype=jnp.float32)).astype(
        jnp.bfloat16
    )
    t4 = jax.random.randint(k8, (3,), 0, N4, dtype=jnp.int32)
    got4 = jax.block_until_ready(
        label_smoothing_loss(x4, t4, smoothing=0.1, max_tile_rows=16)
    )
    ref4 = _reference(x4, t4, smoothing=0.1)
    assert jnp.allclose(got4, ref4, rtol=1e-3, atol=1e-4), (got4, ref4)

    # Case 5: 2-D input smaller than one vreg block (sub-vreg pad path);
    # targets index the leading axis like the PyTorch module.
    x5 = jax.nn.softmax(jax.random.normal(k9, (2, 100), dtype=jnp.float32), axis=-1)
    t5 = jnp.array([1, 1], dtype=jnp.int32)
    got5 = jax.block_until_ready(label_smoothing_loss(x5, t5, smoothing=0.2))
    ref5 = _reference(x5, t5, smoothing=0.2)
    assert jnp.allclose(got5, ref5, rtol=1e-4, atol=1e-5), (got5, ref5)

    print("KERNEL_OK")
</pallas_src>

<mosaic_0001>
module attributes {stable_mosaic.version = 11 : i64} {
  func.func @kernel(%arg0: i32, %arg1: i32, %arg2: memref<8x128xf32, #tpu.memory_space<vmem>>, %arg3: memref<1x8x128xf32, #tpu.memory_space<vmem>>) attributes {dimension_semantics = [#tpu.dimension_semantics<parallel>, #tpu.dimension_semantics<arbitrary>], iteration_bounds = array<i64: 1, 1>, scalar_prefetch = 0 : i64, scratch_operands = 0 : i64, tpu.core_type = #tpu.core_type<tc>, window_params = [{transform_indices = @transform_0, window_bounds = array<i64: 8, 128>}, {transform_indices = @transform_1, window_bounds = array<i64: 1, 8, 128>}]} {
    %c0_i32 = arith.constant 0 : i32
    %0 = arith.cmpi eq, %arg1, %c0_i32 : i32
    %1 = arith.extui %0 : i1 to i32
    %c0_i32_0 = arith.constant 0 : i32
    %2 = arith.cmpi ne, %1, %c0_i32_0 : i32
    scf.if %2 {
      %cst_11 = arith.constant 0.000000e+00 : f32
      %24 = vector.broadcast %cst_11 : f32 to vector<8x128xf32>
      %c0_12 = arith.constant 0 : index
      %c0_13 = arith.constant 0 : index
      %c0_14 = arith.constant 0 : index
      %25 = vector.load %arg3[%c0_12, %c0_13, %c0_14] : memref<1x8x128xf32, #tpu.memory_space<vmem>>, vector<1x8x128xf32>
      %26 = vector.shape_cast %25 : vector<1x8x128xf32> to vector<8x128xf32>
      %27 = vector.shape_cast %24 : vector<8x128xf32> to vector<1x8x128xf32>
      tpu.vector_store %arg3[%c0_12, %c0_13, %c0_14], %27 {strides = array<i32>} : memref<1x8x128xf32, #tpu.memory_space<vmem>>, vector<1x8x128xf32>,
    } else {
    }
    %c1_i32 = arith.constant 1 : i32
    %3 = arith.muli %arg0, %c1_i32 : i32
    %4 = arith.addi %3, %arg1 : i32
    %c8_i32 = arith.constant 8 : i32
    %5 = arith.muli %4, %c8_i32 : i32
    %6 = tpu.iota {dimensions = array<i32: 0>} : vector<8x128xi32>
    %c8_i32_1 = arith.constant 8 : i32
    %7 = arith.subi %c8_i32_1, %5 : i32
    %8 = vector.broadcast %7 : i32 to vector<8x128xi32>
    %9 = arith.cmpi slt, %6, %8 : vector<8x128xi32>
    %c0 = arith.constant 0 : index
    %c0_2 = arith.constant 0 : index
    %10 = vector.load %arg2[%c0, %c0_2] : memref<8x128xf32, #tpu.memory_space<vmem>>, vector<8x128xf32>
    %cst = arith.constant 1.000000e+00 : f32
    %11 = vector.broadcast %cst : f32 to vector<8x128xf32>
    %12 = arith.select %9, %10, %11 : vector<8x128xi1>, vector<8x128xf32>
    %13 = math.log %12 : vector<8x128xf32>
    %cst_3 = arith.constant 0.000000e+00 : f32
    %14 = vector.broadcast %cst_3 : f32 to vector<8x128xf32>
    %15 = arith.subf %14, %13 : vector<8x128xf32>
    %c0_4 = arith.constant 0 : index
    %c0_5 = arith.constant 0 : index
    %c0_6 = arith.constant 0 : index
    %16 = vector.load %arg3[%c0_4, %c0_5, %c0_6] : memref<1x8x128xf32, #tpu.memory_space<vmem>>, vector<1x8x128xf32>
    %17 = vector.shape_cast %16 : vector<1x8x128xf32> to vector<8x128xf32>
    %18 = vector.shape_cast %15 : vector<8x128xf32> to vector<1x8x128xf32>
    %cst_7 = arith.constant dense<0.000000e+00> : vector<8x128xf32>
    %19 = vector.multi_reduction <add>, %18, %cst_7 [0] : vector<1x8x128xf32> to vector<8x128xf32>
    %20 = arith.addf %17, %19 : vector<8x128xf32>
    %c0_8 = arith.constant 0 : index
    %c0_9 = arith.constant 0 : index
    %c0_10 = arith.constant 0 : index
    %21 = vector.load %arg3[%c0_8, %c0_9, %c0_10] : memref<1x8x128xf32, #tpu.memory_space<vmem>>, vector<1x8x128xf32>
    %22 = vector.shape_cast %21 : vector<1x8x128xf32> to vector<8x128xf32>
    %23 = vector.shape_cast %20 : vector<8x128xf32> to vector<1x8x128xf32>
    tpu.vector_store %arg3[%c0_8, %c0_9, %c0_10], %23 {strides = array<i32>} : memref<1x8x128xf32, #tpu.memory_space<vmem>>, vector<1x8x128xf32>,
    return
  }
  func.func @transform_0(%arg0: i32, %arg1: i32) -> (i32, i32) {
    %c1_i32 = arith.constant 1 : i32
    %0 = arith.muli %arg0, %c1_i32 : i32
    %1 = arith.addi %0, %arg1 : i32
    %c0_i32 = arith.constant 0 : i32
    %2 = arith.minsi %1, %c0_i32 : i32
    %c0_i32_0 = arith.constant 0 : i32
    %c0_i32_1 = arith.constant 0 : i32
    return %2, %c0_i32_0 : i32, i32
  }
  func.func @transform_1(%arg0: i32, %arg1: i32) -> (i32, i32, i32) {
    %c0_i32 = arith.constant 0 : i32
    %c0_i32_0 = arith.constant 0 : i32
    %c0_i32_1 = arith.constant 0 : i32
    return %arg0, %c0_i32, %c0_i32_0 : i32, i32, i32
  }
}

</mosaic_0001>

<bundles_post_ra>
// kernel: tpu_custom_call.1
= control target key start
LH: loop header
LB: loop body
LE: loop exit
PB: predicated region body
PF: predicated region fallthrough
CT: control target
= control target key end

     0   :  { %6 = vsyncpa [#allocation3], 0  ;;  %s146_s0 = inlined_call_operand.hbm [shape: f32[8,128], index: 0, kind: input, shape index: {}]   ;;  %s147_s1 = inlined_call_operand.hbm [shape: f32[1,8,128], index: 1, kind: output, shape index: {}]  }
   0x1   :  { %7 = vsyncpa [#allocation4], 0  ;;  %s18_s8 = sshll.u32 %s146_s0, 4  ;;  %s128_s9 = smov [#allocation2]   ;;  %s19_s8 = int_to_ptr.hbm [resolvable:$true] %s18_s8 }
   0x2   :  { %s20_s10 = sshll.u32 %s128_s9, 4  ;;  %s21_s10 = int_to_ptr.vmem [resolvable:$true] %s20_s10 }
   0x3   :  { %23 = dma.hbm_to_vmem [thread:$0]  %s19_s8, 128, %s21_s10, [#allocation3]  }
   0x4   :  { %124 = dma.done.wait [#allocation3], 128  }
   0x5   :  { %125 = vsyncadd [#allocation3], 4294967168  ;;  %v43_v0 = vld [vmem:[#allocation2] sm:$0xff]  ;;  %s129_s11 = smov [#allocation5]   ;;  %s59_s15 = sshll.u32 %s147_s1, 4  ;;  %s60_s15 = int_to_ptr.hbm [resolvable:$true] %s59_s15 }
   0x6   :  { %74 = vlog2.f32 %v43_v0  ;;  %s57_s12 = sshll.u32 %s129_s11, 4  ;;  %s58_s12 = int_to_ptr.vmem [resolvable:$true] %s57_s12 }
   0xc   :  { %v75_v1 = vpop.eup %74 }
   0xd   :  { %v46_v2 = vmul.f32 0.6931472, %v75_v1 }
   0xf   :  { %v47_v3 = vsub.f32 0.0, %v46_v2 }
  0x11   :  { %51 = vst [vmem:[#allocation5] sm:$0xff] %v47_v3 }
  0x12   :  { %62 = dma.vmem_to_hbm [thread:$0]  %s58_s12, 128, %s60_s15, [#allocation4]  }
  0x13   :  { %126 = dma.done.wait [#allocation4], 128  }
  0x14   :  { %127 = vsyncadd [#allocation4], 4294967168 }
  0x15   :  { %67 = vsyncpa [#allocation3], 1 }
  0x16   :  { %68 = vsyncpa [#allocation4], 1 }

</bundles_post_ra>
